<compile_context>
chip_gen: v5e
topology: v5e:2x2
jax: 0.10.0
libtpu: 0.0.40
codegen_flags: <defaults>
</compile_context>

<pallas_src>
import math
from functools import partial

import jax
import jax.numpy as jnp
from jax.experimental import pallas as pl
from jax.experimental.pallas import tpu as pltpu

LOG_2PI = math.log(2.0 * math.pi)
TWO_PI = 2.0 * math.pi

_ROW_TILE = 512  # rows per grid step (512 x 128 f32 tile ~= 256 KiB per buffer)


def _round_up(x: int, m: int) -> int:
    return ((x + m - 1) // m) * m


# --------------------------------------------------------------------------- #
# Kernels
# --------------------------------------------------------------------------- #
def _sample_logprob_kernel(u1_ref, u2_ref, z_ref, lp_ref):
    """Box-Muller transform of pre-drawn uniforms -> N(0, I) samples, fused with
    their row-wise log probability.

    u1_ref, u2_ref : (tile_n, D/2) f32 uniforms in [0, 1)
    z_ref          : (tile_n, D)   output samples
    lp_ref         : (tile_n, 1)   output log prob
    """
    u1 = jnp.maximum(u1_ref[...], jnp.float32(1e-12))  # avoid log(0)
    u2 = u2_ref[...]

    r = jnp.sqrt(-2.0 * jnp.log(u1))            # EUP: log + sqrt per *pair*
    theta = jnp.float32(TWO_PI) * u2
    # Use both Box-Muller outputs; lane-concat keeps the z store lane-dense.
    z = jnp.concatenate([r * jnp.cos(theta), r * jnp.sin(theta)], axis=-1)
    z_ref[...] = z.astype(z_ref.dtype)

    # log N(z; 0, I) = -0.5 * (sum z^2 + D * log(2*pi))
    d = z.shape[-1]
    lp_ref[...] = -0.5 * (
        jnp.sum(z * z, axis=-1, keepdims=True) + jnp.float32(d * LOG_2PI)
    )


def _logprob_kernel(z_ref, lp_ref):
    """Row-wise standard-normal log density of given samples."""
    z = z_ref[...].astype(jnp.float32)
    d = z.shape[-1]
    lp_ref[...] = -0.5 * (
        jnp.sum(z * z, axis=-1, keepdims=True) + jnp.float32(d * LOG_2PI)
    )


# --------------------------------------------------------------------------- #
# Wrappers
# --------------------------------------------------------------------------- #
def _row_tiling(n: int) -> tuple[int, int]:
    """Return (n_padded, tile_n) with tile_n | n_padded, both multiples of 8."""
    n_pad = _round_up(max(n, 8), 8)
    tile_n = min(_ROW_TILE, n_pad)
    n_pad = _round_up(n_pad, tile_n)
    return n_pad, tile_n


@partial(jax.jit, static_argnums=(1, 2))
def _sample_and_logprob(key: jax.Array, num_sample: int, dim: int):
    half = dim // 2
    n_pad, tile_n = _row_tiling(num_sample)
    grid = (n_pad // tile_n,)

    k1, k2 = jax.random.split(key)
    u1 = jax.random.uniform(k1, (n_pad, half), dtype=jnp.float32)
    u2 = jax.random.uniform(k2, (n_pad, half), dtype=jnp.float32)

    z, lp = pl.pallas_call(
        _sample_logprob_kernel,
        out_shape=(
            jax.ShapeDtypeStruct((n_pad, dim), jnp.float32),
            jax.ShapeDtypeStruct((n_pad, 1), jnp.float32),
        ),
        grid=grid,
        in_specs=[
            pl.BlockSpec((tile_n, half), lambda i: (i, 0)),
            pl.BlockSpec((tile_n, half), lambda i: (i, 0)),
        ],
        out_specs=(
            pl.BlockSpec((tile_n, dim), lambda i: (i, 0)),
            pl.BlockSpec((tile_n, 1), lambda i: (i, 0)),
        ),
        compiler_params=pltpu.CompilerParams(
            dimension_semantics=("parallel",),
        ),
        cost_estimate=pl.CostEstimate(
            flops=6 * n_pad * dim,
            transcendentals=2 * n_pad * dim,          # log+sqrt+cos+sin per pair
            bytes_accessed=2 * n_pad * dim * 4 + n_pad * 4,
        ),
    )(u1, u2)
    return z[:num_sample], lp[:num_sample, 0]


@jax.jit
def _log_prob(z: jax.Array) -> jax.Array:
    z = z.astype(jnp.float32)
    n, dim = z.shape
    n_pad, tile_n = _row_tiling(n)
    if n_pad != n:
        z = jnp.pad(z, ((0, n_pad - n), (0, 0)))

    # TODO(synk): when z is produced by another Pallas kernel (e.g. a flow
    # layer), fuse this reduction into that producer's epilogue instead of
    # paying a full extra HBM pass over z.
    lp = pl.pallas_call(
        _logprob_kernel,
        out_shape=jax.ShapeDtypeStruct((n_pad, 1), jnp.float32),
        grid=(n_pad // tile_n,),
        in_specs=[pl.BlockSpec((tile_n, dim), lambda i: (i, 0))],
        out_specs=pl.BlockSpec((tile_n, 1), lambda i: (i, 0)),
        compiler_params=pltpu.CompilerParams(
            dimension_semantics=("parallel",),
        ),
        cost_estimate=pl.CostEstimate(
            flops=2 * n_pad * dim,
            transcendentals=0,
            bytes_accessed=n_pad * dim * 4 + n_pad * 4,
        ),
    )(z)
    return lp[:n, 0]


class Distribution:
    """Concrete standard-normal instantiation of the abstract NFDMC Distribution."""

    def __init__(self, dim_sample: int, seed: int = 0) -> None:
        if dim_sample % 2 != 0:
            raise ValueError("dim_sample must be even (Box-Muller pairing).")
        self.dim_sample = dim_sample
        self._key = jax.random.PRNGKey(seed)

    def _next_key(self) -> jax.Array:
        self._key, sub = jax.random.split(self._key)
        return sub

    def forward(self, num_sample: int = 1):
        return _sample_and_logprob(self._next_key(), num_sample, self.dim_sample)

    def __call__(self, num_sample: int = 1):
        return self.forward(num_sample)

    def log_prob(self, z: jax.Array) -> jax.Array:
        return _log_prob(z)

    def sample(self, num_sample: int = 1) -> jax.Array:
        z, _ = self.forward(num_sample)
        return z


# --------------------------------------------------------------------------- #
# Demo / smoke test
# --------------------------------------------------------------------------- #
if __name__ == "__main__":
    key = jax.random.PRNGKey(0)
    num_sample, dim_sample = 8, 128

    dist = Distribution(dim_sample=dim_sample, seed=0)

    # forward: Box-Muller sampling + fused in-kernel log_prob
    z, log_p = dist.forward(num_sample)
    z = jax.block_until_ready(z)
    log_p = jax.block_until_ready(log_p)
    assert z.shape == (num_sample, dim_sample)
    assert log_p.shape == (num_sample,)
    assert jnp.all(jnp.isfinite(z)) and jnp.all(jnp.isfinite(log_p))

    # loose sanity check on the sample statistics (1024 draws)
    assert abs(float(jnp.mean(z))) < 0.25
    assert abs(float(jnp.std(z)) - 1.0) < 0.25

    # in-kernel log_prob must match a recomputation from the stored samples
    lp_self = jax.block_until_ready(dist.log_prob(z))
    assert jnp.allclose(lp_self, log_p, atol=1e-3, rtol=1e-5)

    # log_prob kernel on externally supplied samples (row count not a multiple
    # of 8 exercises the padding path); cross-check against a pure-JAX reference.
    z_ext = jax.random.normal(key, (10, dim_sample), dtype=jnp.float32)
    lp_ext = jax.block_until_ready(dist.log_prob(z_ext))
    lp_ref = -0.5 * (jnp.sum(z_ext * z_ext, axis=-1) + dim_sample * LOG_2PI)
    assert lp_ext.shape == (10,)
    assert jnp.allclose(lp_ext, lp_ref, atol=1e-3, rtol=1e-5)

    # repeated forward() calls advance the RNG (different samples)
    z2, _ = dist.forward(num_sample)
    z2 = jax.block_until_ready(z2)
    assert not bool(jnp.allclose(z, z2))

    print("KERNEL_OK")
</pallas_src>

<mosaic_0001>
module attributes {stable_mosaic.version = 11 : i64} {
  func.func @_sample_logprob_kernel(%arg0: i32, %arg1: memref<8x64xf32, #tpu.memory_space<vmem>>, %arg2: memref<8x64xf32, #tpu.memory_space<vmem>>, %arg3: memref<8x128xf32, #tpu.memory_space<vmem>>, %arg4: memref<8x1xf32, #tpu.memory_space<vmem>>) attributes {dimension_semantics = [#tpu.dimension_semantics<parallel>], iteration_bounds = array<i64: 1>, scalar_prefetch = 0 : i64, scratch_operands = 0 : i64, tpu.core_type = #tpu.core_type<tc>, window_params = [{transform_indices = @transform_0, window_bounds = array<i64: 8, 64>}, {transform_indices = @transform_1, window_bounds = array<i64: 8, 64>}, {transform_indices = @transform_2, window_bounds = array<i64: 8, 128>}, {transform_indices = @transform_3, window_bounds = array<i64: 8, 1>}]} {
    %c0 = arith.constant 0 : index
    %c0_0 = arith.constant 0 : index
    %0 = vector.load %arg1[%c0, %c0_0] : memref<8x64xf32, #tpu.memory_space<vmem>>, vector<8x64xf32>
    %cst = arith.constant 9.99999996E-13 : f32
    %1 = vector.broadcast %cst : f32 to vector<8x64xf32>
    %2 = arith.maximumf %0, %1 : vector<8x64xf32>
    %c0_1 = arith.constant 0 : index
    %c0_2 = arith.constant 0 : index
    %3 = vector.load %arg2[%c0_1, %c0_2] : memref<8x64xf32, #tpu.memory_space<vmem>>, vector<8x64xf32>
    %4 = math.log %2 : vector<8x64xf32>
    %cst_3 = arith.constant -2.000000e+00 : f32
    %5 = vector.broadcast %cst_3 : f32 to vector<8x64xf32>
    %6 = arith.mulf %5, %4 : vector<8x64xf32>
    %7 = math.sqrt %6 : vector<8x64xf32>
    %cst_4 = arith.constant 6.28318548 : f32
    %8 = vector.broadcast %cst_4 : f32 to vector<8x64xf32>
    %9 = arith.mulf %8, %3 : vector<8x64xf32>
    %10 = math.cos %9 : vector<8x64xf32>
    %11 = arith.mulf %7, %10 : vector<8x64xf32>
    %12 = math.sin %9 : vector<8x64xf32>
    %13 = arith.mulf %7, %12 : vector<8x64xf32>
    %14 = tpu.concatenate %11, %13 in 1 : vector<8x64xf32>, vector<8x64xf32> -> vector<8x128xf32>
    %c0_5 = arith.constant 0 : index
    %c0_6 = arith.constant 0 : index
    %15 = vector.load %arg3[%c0_5, %c0_6] : memref<8x128xf32, #tpu.memory_space<vmem>>, vector<8x128xf32>
    tpu.vector_store %arg3[%c0_5, %c0_6], %14 {strides = array<i32>} : memref<8x128xf32, #tpu.memory_space<vmem>>, vector<8x128xf32>,
    %16 = arith.mulf %14, %14 : vector<8x128xf32>
    %cst_7 = arith.constant dense<0.000000e+00> : vector<8xf32>
    %17 = vector.multi_reduction <add>, %16, %cst_7 [1] : vector<8x128xf32> to vector<8xf32>
    %18 = vector.shape_cast %17 : vector<8xf32> to vector<8x1xf32>
    %cst_8 = arith.constant 235.24826 : f32
    %19 = vector.broadcast %cst_8 : f32 to vector<8x1xf32>
    %20 = arith.addf %18, %19 : vector<8x1xf32>
    %cst_9 = arith.constant -5.000000e-01 : f32
    %21 = vector.broadcast %cst_9 : f32 to vector<8x1xf32>
    %22 = arith.mulf %21, %20 : vector<8x1xf32>
    %c0_10 = arith.constant 0 : index
    %c0_11 = arith.constant 0 : index
    %23 = vector.load %arg4[%c0_10, %c0_11] : memref<8x1xf32, #tpu.memory_space<vmem>>, vector<8x1xf32>
    tpu.vector_store %arg4[%c0_10, %c0_11], %22 {strides = array<i32>} : memref<8x1xf32, #tpu.memory_space<vmem>>, vector<8x1xf32>,
    return
  }
  func.func @transform_0(%arg0: i32) -> (i32, i32) {
    %c0_i32 = arith.constant 0 : i32
    %c0_i32_0 = arith.constant 0 : i32
    return %arg0, %c0_i32 : i32, i32
  }
  func.func @transform_1(%arg0: i32) -> (i32, i32) {
    %c0_i32 = arith.constant 0 : i32
    %c0_i32_0 = arith.constant 0 : i32
    return %arg0, %c0_i32 : i32, i32
  }
  func.func @transform_2(%arg0: i32) -> (i32, i32) {
    %c0_i32 = arith.constant 0 : i32
    %c0_i32_0 = arith.constant 0 : i32
    return %arg0, %c0_i32 : i32, i32
  }
  func.func @transform_3(%arg0: i32) -> (i32, i32) {
    %c0_i32 = arith.constant 0 : i32
    %c0_i32_0 = arith.constant 0 : i32
    return %arg0, %c0_i32 : i32, i32
  }
}

</mosaic_0001>

<bundles_post_ra>
// kernel: _sample_and_logprob.3
= control target key start
LH: loop header
LB: loop body
LE: loop exit
PB: predicated region body
PF: predicated region fallthrough
CT: control target
= control target key end

     0   :  { %s519_s0 = inlined_call_operand.vmem [shape: f32[8,64], index: 0, kind: input, shape index: {}]   ;;  %s520_s1 = inlined_call_operand.vmem [shape: f32[8,64], index: 1, kind: input, shape index: {}]   ;;  %s521_s2 = inlined_call_operand.hbm [shape: f32[8,128], index: 2, kind: output, shape index: {0}]   ;;  %s522_s3 = inlined_call_operand.vmem [shape: f32[8,1], index: 3, kind: output, shape index: {1}]  }
   0x1   :  { %v16_v0 = vld [vmem:[%s520_s1] sm:$0xff] }
   0x2   :  { %v455_v1 = vmul.f32 6.2831855, %v16_v0 }
   0x4   :  { %v36_v2 = vand.u32 2139095040, %v455_v1 }
   0x5   :  { %9 = vsyncpa [#allocation3], 0  ;;  %v33_v4 = vand.u32 2147483647, %v455_v1  ;;  %v423_v13 = vmov 683565275  }
   0x6   :  { %v37_v3 = vshrl.u32 %v36_v2, 23  ;;  %v424_v15 = vmov 2475754826   ;;  %v425_v17 = vmov 2131351028   ;;  %v429_v2 = vmov 0  }
   0x7   :  { %v40_v7 = vand.u32 8388607, %v33_v4  ;;  %v426_v19 = vmov 2102212464   ;;  %v427_v21 = vmov 920167782  }
   0x8   :  { %v378_v5 = vadd.s32 4294967169, %v37_v3  ;;  %v428_v27 = vmov 1326507024   ;;  %vm35_vm12 = vcmp.lt.s32.totalorder %v455_v1, 0  ;;  %vm34_vm13 = vcmp.le.f32.partialorder %v33_v4, 0.7853982 }
   0x9   :  { %v41_v10 = vor.u32 8388608, %v40_v7  ;;  %s431_s15 = smov [#allocation2]   ;;  %s365_s19 = sshll.u32 %s521_s2, 4  ;;  %s366_s19 = int_to_ptr.hbm [resolvable:$true] %s365_s19 }
   0xa   :  { %v43_v6 = vadd.s32 1, %v378_v5  ;;  %s363_s16 = sshll.u32 %s431_s15, 4  ;;  %s364_s16 = int_to_ptr.vmem [resolvable:$true] %s363_s16 }
   0xb   :  { %v464_v29 = vshll.u32 %v41_v10, 8 }
   0xc   :  { %vm44_vm0 = vcmp.gt.s32.totalorder %v43_v6, 0 }
   0xd   :  { %v45_v8 = vsel %vm44_vm0, %v43_v6, 0  ;;  %v82_v41 = vand.u32 65535, %v464_v29  ;;  %v83_v42 = vshrl.u32 %v464_v29, 16 }
   0xe   :  { %v47_v9 = vand.u32 31, %v45_v8  ;;  %v461_v11 = vshrl.u32 %v45_v8, 5 }
  0x10   :  { %v48_v12 = vsub.s32 32, %v47_v9  ;;  %v50_v14 = vshll.u32 %v423_v13, %v47_v9  ;;  %v53_v16 = vshll.u32 %v424_v15, %v47_v9  ;;  %v56_v18 = vshll.u32 %v425_v17, %v47_v9 }
  0x11   :  { %v59_v20 = vshll.u32 %v426_v19, %v47_v9  ;;  %v62_v22 = vshll.u32 %v427_v21, %v47_v9  ;;  %vm65_vm1 = vcmp.lt.s32.totalorder %v461_v11, 1  ;;  %vm68_vm2 = vcmp.lt.s32.totalorder %v461_v11, 4 }
  0x12   :  { %v51_v23 = vshrl.u32 %v424_v15, %v48_v12  ;;  %v54_v24 = vshrl.u32 %v425_v17, %v48_v12  ;;  %v57_v25 = vshrl.u32 %v426_v19, %v48_v12  ;;  %v60_v26 = vshrl.u32 %v427_v21, %v48_v12  ;;  %v14_v21 = vld [vmem:[%s519_s0] sm:$0xff]  ;;  %s430_s0 = smov 64  }
  0x13   :  { %v63_v28 = vshrl.u32 %v428_v27, %v48_v12  ;;  %vm67_vm3 = vcmp.lt.s32.totalorder %v461_v11, 3  ;;  %vm66_vm4 = vcmp.lt.s32.totalorder %v461_v11, 2  ;;  %v49_v49 = vshrl.u32 %v423_v13, %v48_v12 }
  0x14   :  { %v52_v30 = vor.u32 %v51_v23, %v50_v14  ;;  %v55_v31 = vor.u32 %v54_v24, %v53_v16  ;;  %v58_v32 = vor.u32 %v57_v25, %v56_v18  ;;  %v61_v33 = vor.u32 %v60_v26, %v59_v20 }
  0x15   :  { %v64_v34 = vor.u32 %v63_v28, %v62_v22  ;;  %v15_v26 = vmax.f32 %v14_v21, 1e-12 }
  0x16   :  { %v73_v35 = vsel %vm65_vm1, %v52_v30, %v55_v31  ;;  %v74_v36 = vsel %vm68_vm2, %v61_v33, 920167782  ;;  %v77_v37 = vsel %vm65_vm1, %v55_v31, %v58_v32  ;;  %v69_v61 = vsel %vm65_vm1, %v49_v49, %v52_v30 }
  0x17   :  { %v78_v38 = vsel %vm68_vm2, %v64_v34, 1326507024  ;;  %v75_v39 = vsel %vm67_vm3, %v58_v32, %v74_v36  ;;  %v70_v0 = vsel %vm68_vm2, %v58_v32, 2102212464  ;;  %393 = vlog2.f32 %v15_v26 }
  0x18   :  { %v79_v40 = vsel %vm67_vm3, %v61_v33, %v78_v38  ;;  %v76_v43 = vsel %vm66_vm4, %v73_v35, %v75_v39  ;;  %v71_v13 = vsel %vm67_vm3, %v55_v31, %v70_v0 }
  0x19   :  { %v80_v44 = vsel %vm66_vm4, %v77_v37, %v79_v40  ;;  %v106_v47 = vand.u32 65535, %v76_v43  ;;  %v107_v48 = vshrl.u32 %v76_v43, 16  ;;  %v72_v22 = vsel %vm66_vm4, %v69_v61, %v71_v13 }
  0x1a   :  { %v84_v45 = vand.u32 65535, %v80_v44  ;;  %v85_v46 = vshrl.u32 %v80_v44, 16  ;;  %v126_v27 = vmul.u32 %v464_v29, %v72_v22 }
  0x1b   :  { %v108_v53 = vmul.u32 %v106_v47, %v82_v41  ;;  %v109_v54 = vmul.u32 %v107_v48, %v82_v41  ;;  %v110_v55 = vmul.u32 %v106_v47, %v83_v42  ;;  %v111_v59 = vmul.u32 %v107_v48, %v83_v42 }
  0x1c   :  { %v86_v50 = vmul.u32 %v84_v45, %v82_v41  ;;  %v87_v51 = vmul.u32 %v85_v46, %v82_v41  ;;  %v88_v52 = vmul.u32 %v84_v45, %v83_v42  ;;  %v89_v56 = vmul.u32 %v85_v46, %v83_v42 }
  0x1d   :  { %v112_v60 = vshll.u32 %v109_v54, 16  ;;  %v114_v63 = vshll.u32 %v110_v55, 16  ;;  %v113_v10 = vshrl.u32 %v109_v54, 16  ;;  %v115_v17 = vshrl.u32 %v110_v55, 16  ;;  %v394_v34 = vpop.eup %393 }
  0x1e   :  { %v90_v57 = vshll.u32 %v87_v51, 16  ;;  %v92_v58 = vshll.u32 %v88_v52, 16  ;;  %v91_v6 = vshrl.u32 %v87_v51, 16  ;;  %v93_v14 = vshrl.u32 %v88_v52, 16 }
  0x1f   :  { %vm116_vm6 = vc.u32 %v108_v53, %v112_v60  ;;  %v118_v5 = vadd.s32 %v112_v60, %v108_v53  ;;  %v18_v37 = vmul.f32 0.6931472, %v394_v34 }
  0x20   :  { %vm94_vm5 = vc.u32 %v86_v50, %v90_v57  ;;  %v96_v62 = vadd.s32 %v90_v57, %v86_v50  ;;  %v117_v8 = vsel %vm116_vm6, 1, %v429_v2  ;;  %vm176_vm6 = vweird.f32 %v455_v1 }
  0x21   :  { %v95_v3 = vsel %vm94_vm5, 1, %v429_v2  ;;  %v119_v12 = vadd.s32 %v117_v8, %v111_v59  ;;  %vm120_vm8 = vc.u32 %v118_v5, %v114_v63  ;;  %v122_v20 = vadd.s32 %v118_v5, %v114_v63 }
  0x22   :  { %v97_v7 = vadd.s32 %v95_v3, %v89_v56  ;;  %vm98_vm7 = vc.u32 %v96_v62, %v92_v58  ;;  %v121_v16 = vsel %vm120_vm8, 1, %v429_v2  ;;  %v499_v39 = vmul.f32 -2.0, %v18_v37 }
  0x23   :  { %v99_v9 = vsel %vm98_vm7, 1, %v429_v2  ;;  %v123_v18 = vadd.s32 %v121_v16, %v119_v12  ;;  %vm348_vm7 = vcmask 523264   ;;  %vm356_vm8 = vcmask 7168  }
  0x24   :  { %v101_v15 = vadd.s32 %v99_v9, %v97_v7  ;;  %395 = vrsqrt.f32 %v499_v39  ;;  %vm27_vm14 = vcmp.eq.f32.partialorder %v499_v39, inf  ;;  %vm29_vm1 = vcmp.eq.f32.partialorder %v499_v39, 0.0 }
  0x25   :  { %v124_v23 = vadd.s32 %v123_v18, %v113_v10  ;;  %v30_v21 = vand.u32 2147483648, %v499_v39 }
  0x26   :  { %v102_v19 = vadd.s32 %v101_v15, %v91_v6 }
  0x27   :  { %v125_v25 = vadd.s32 %v124_v23, %v115_v17 }
  0x28   :  { %v103_v24 = vadd.s32 %v102_v19, %v93_v14 }
  0x29   :  { %v129_v28 = vadd.s32 1, %v125_v25 }
  0x2a   :  { %vm128_vm9 = vc.u32 %v103_v24, %v122_v20  ;;  %v127_v29 = vadd.s32 %v122_v20, %v103_v24  ;;  %v396_v48 = vpop.eup %395 }
  0x2b   :  { %v130_v30 = vsel %vm128_vm9, %v129_v28, %v125_v25  ;;  %v21_v53 = vmul.f32 %v396_v48, %v499_v39 }
  0x2c   :  { %v131_v31 = vadd.s32 %v130_v30, %v126_v27 }
  0x2d   :  { %v22_v56 = vmul.f32 %v396_v48, %v21_v53 }
  0x2e   :  { %v132_v32 = vadd.s32 536870912, %v131_v31 }
  0x2f   :  { %v23_v60 = vmul.f32 0.5, %v22_v56 }
  0x30   :  { %v133_v33 = vshrl.u32 %v132_v32, 30 }
  0x31   :  { %v24_v5 = vsub.f32 1.5, %v23_v60 }
  0x32   :  { %v134_v35 = vshll.u32 %v133_v33, 30  ;;  %v157_v57 = vsub.s32 4, %v133_v33 }
  0x33   :  { %v25_v12 = vmul.f32 %v396_v48, %v24_v5 }
  0x34   :  { %v135_v36 = vsub.s32 %v131_v31, %v134_v35  ;;  %v158_v61 = vsel %vm35_vm12, %v157_v57, %v133_v33 }
  0x35   :  { %v160_v0 = vsel %vm34_vm13, 0, %v158_v61  ;;  %v26_v18 = vmul.f32 %v25_v12, %v499_v39 }
  0x36   :  { %vm136_vm10 = vcmp.lt.s32.totalorder %v135_v36, 0  ;;  %v137_v11 = vsub.s32 0, %v135_v36  ;;  %v332_v8 = vadd.s32 3, %v160_v0  ;;  %v177_v4 = vand.u32 3, %v160_v0 }
  0x37   :  { %v28_v24 = vsel %vm27_vm14, %v499_v39, %v26_v18 }
  0x38   :  { %v138_v38 = vsel %vm136_vm10, %v137_v11, %v135_v36  ;;  %v333_v15 = vand.u32 3, %v332_v8  ;;  %vm182_vm15 = vcmp.eq.s32.totalorder %v177_v4, 2  ;;  %vm178_vm2 = vcmp.lt.s32.totalorder %v177_v4, 2 }
  0x39   :  { %v139_v40 = vclz %v138_v38  ;;  %vm179_vm3 = vcmp.eq.s32.totalorder %v177_v4, 0  ;;  %v31_v28 = vsel %vm29_vm1, %v30_v21, %v28_v24 }
  0x3a   :  { %vm338_vm0 = vcmp.eq.s32.totalorder %v333_v15, 2  ;;  %vm335_vm4 = vcmp.eq.s32.totalorder %v333_v15, 0  ;;  %vm334_vm5 = vcmp.lt.s32.totalorder %v333_v15, 2 }
  0x3b   :  { %v379_v41 = vadd.s32 4294967294, %v139_v40 }
  0x3d   :  { %vm380_vm11 = vcmp.lt.s32.totalorder %v379_v41, 0 }
  0x3e   :  { %v142_v42 = vsel %vm380_vm11, 0, %v379_v41 }
  0x3f   :  { %v143_v43 = vsub.s32 32, %v142_v42  ;;  %v144_v44 = vshll.u32 %v135_v36, %v142_v42  ;;  %v147_v45 = vsub.s32 4294967266, %v142_v42 }
  0x41   :  { %v145_v46 = vshrl.u32 %v127_v29, %v143_v43  ;;  %v148_v47 = vadd.s32 127, %v147_v45 }
  0x43   :  { %v146_v49 = vor.u32 %v145_v46, %v144_v44  ;;  %v149_v50 = vshll.u32 %v148_v47, 23 }
  0x45   :  { %v150_v51 = vor.u32 4788187, %v149_v50  ;;  %v153_v52 = vcvt.s32.f32 %v146_v49 }
  0x47   :  { %v151_v54 = vand.u32 2147483647, %v150_v51 }
  0x49   :  { %v154_v55 = vmul.f32 %v153_v52, %v151_v54 }
  0x4b   :  { %v155_v58 = vxor.u32 2147483648, %v154_v55 }
  0x4d   :  { %v156_v59 = vsel %vm35_vm12, %v155_v58, %v154_v55 }
  0x4e   :  { %v159_v62 = vsel %vm34_vm13, %v455_v1, %v156_v59 }
  0x4f   :  { %v161_v63 = vmul.f32 %v159_v62, %v159_v62 }
  0x51   :  { %v162_v2 = vmul.f32 -0.001358992, %v161_v63  ;;  %v169_v3 = vmul.f32 -0.00019511016, %v161_v63 }
  0x53   :  { %v163_v6 = vadd.f32 0.041655596, %v162_v2  ;;  %v170_v7 = vadd.f32 0.008332121, %v169_v3 }
  0x55   :  { %v164_v9 = vmul.f32 %v163_v6, %v161_v63  ;;  %v171_v10 = vmul.f32 %v170_v7, %v161_v63 }
  0x57   :  { %v165_v13 = vadd.f32 -0.4999988, %v164_v9  ;;  %v172_v14 = vadd.f32 -0.16666654, %v171_v10 }
  0x59   :  { %v166_v16 = vmul.f32 %v165_v13, %v161_v63  ;;  %v173_v17 = vmul.f32 %v172_v14, %v161_v63 }
  0x5b   :  { %v167_v19 = vadd.f32 1.0, %v166_v16  ;;  %v174_v20 = vadd.f32 1.0, %v173_v17 }
  0x5d   :  { %v175_v22 = vmul.f32 %v174_v20, %v159_v62  ;;  %v183_v23 = vxor.u32 2147483648, %v167_v19 }
  0x5f   :  { %v180_v25 = vxor.u32 2147483648, %v175_v22  ;;  %v184_v26 = vsel %vm182_vm15, %v183_v23, %v175_v22  ;;  %v340_v27 = vsel %vm338_vm0, %v183_v23, %v175_v22 }
  0x61   :  { %v181_v30 = vsel %vm179_vm3, %v167_v19, %v180_v25  ;;  %v337_v31 = vsel %vm335_vm4, %v167_v19, %v180_v25 }
  0x62   :  { %v185_v32 = vsel %vm178_vm2, %v181_v30, %v184_v26  ;;  %v341_v33 = vsel %vm334_vm5, %v337_v31, %v340_v27 }
  0x63   :  { %v186_v34 = vsel %vm176_vm6, nan, %v185_v32  ;;  %v342_v35 = vsel %vm176_vm6, nan, %v341_v33 }
  0x64   :  { %v343_v36 = vmul.f32 %v342_v35, %v31_v28  ;;  %v187_v37 = vmul.f32 %v186_v34, %v31_v28 }
  0x66   :  { %345 = vrot.lane.b32.xlu0 %v343_v36, %s430_s0 }
  0xd8   :  { %v346_v11 = vpop.permute.xlu0 %345 }
  0xd9   :  { %v349_v1 = vsel %vm348_vm7, %v187_v37, %v346_v11 }
  0xda   :  { %350 = vst [vmem:[#allocation2] sm:$0xff] %v349_v1  ;;  %v351_v38 = vmul.f32 %v349_v1, %v349_v1 }
  0xdb   :  { %368 = dma.vmem_to_hbm [thread:$0]  %s364_s16, 128, %s366_s19, [#allocation3]  }
  0xdc   :  { %352 = vadd.xlane.f32.xlu0 %v351_v38 }
 0x14f   :  { %v353_v39 = vpop.xlane.xlu0 %352 }
 0x150   :  { %v354_v40 = vadd.f32 235.24826, %v353_v39 }
 0x152   :  { %v355_v41 = vmul.f32 -0.5, %v354_v40 }
 0x154   :  { %357 = vst.msk [vmem:[%s522_s3] sm:$0xff] %vm356_vm8, %v355_v41 }
 0x155   :  { %421 = dma.done.wait [#allocation3], 128  }
 0x156   :  { %422 = vsyncadd [#allocation3], 4294967168 }
 0x157   :  { %377 = vsyncpa [#allocation3], 1 }

</bundles_post_ra>
